<compile_context>
chip_gen: v7x
topology: tpu7x:2x2x1
jax: 0.10.0
libtpu: 0.0.40
codegen_flags: <defaults>
</compile_context>

<pallas_src>
import jax
import jax.numpy as jnp
from jax.experimental import pallas as pl
from jax.experimental.pallas import tpu as pltpu

DROP_P = 0.25
LANE = 128


def _round_up(n, m):
    return ((n + m - 1) // m) * m


def _pad2(a, rows, cols):
    return jnp.pad(a, ((0, rows - a.shape[0]), (0, cols - a.shape[1])))


def _ffnn_kernel(scal_ref, x_ref, mask_ref, w1_ref, b1_ref, w2_ref, b2_ref, out_ref):
    # scal_ref: SMEM f32[2] = [global_min, 1 / (x - min).max()]
    minv = scal_ref[0]
    inv_max = scal_ref[1]

    # normalization: (x - min) * (1/max) — padded x columns hit zero rows of W1,
    # so they contribute nothing regardless of their normalized value.
    xn = (x_ref[...] - minv) * inv_max

    # fc1 + ReLU (MXU matmul, f32 accumulation)
    h = jnp.dot(xn, w1_ref[...], preferred_element_type=jnp.float32) + b1_ref[...]
    h = jnp.maximum(h, 0.0)

    # dropout: mask_ref already holds keep/(1-p), so a single fused multiply
    h = h * mask_ref[...]

    # fc2
    y = jnp.dot(h, w2_ref[...], preferred_element_type=jnp.float32) + b2_ref[...]
    out_ref[...] = y.astype(out_ref.dtype)


def ffnn_forward(x, w1, b1, w2, b2, *, seed=99, training=True, drop_p=DROP_P):
    batch, input_dim = x.shape
    hidden_dim = w1.shape[1]
    output_dim = w2.shape[1]

    x = x.astype(jnp.float32)

    # ---- global normalization scalars, hoisted out of the kernel ----
    minv = jnp.min(x)
    maxv = jnp.max(x - minv)              # torch divides by max AFTER the shift
    inv_max = 1.0 / maxv                  # same NaN/Inf behavior as torch if x is constant
    scal = jnp.stack([minv, inv_max]).astype(jnp.float32)

    # ---- lane-aligned padded dims ----
    in_p = _round_up(input_dim, LANE)
    hid_p = _round_up(hidden_dim, LANE)
    out_p = _round_up(output_dim, LANE)
    tb = min(256, _round_up(batch, 8))    # batch tile (rows), multiple of sublane width
    batch_p = _round_up(batch, tb)

    x_p = _pad2(x, batch_p, in_p)
    w1_p = _pad2(w1.astype(jnp.float32), in_p, hid_p)
    b1_p = _pad2(b1.reshape(1, -1).astype(jnp.float32), 1, hid_p)
    w2_p = _pad2(w2.astype(jnp.float32), hid_p, out_p)
    b2_p = _pad2(b2.reshape(1, -1).astype(jnp.float32), 1, out_p)

    # ---- dropout keep-mask, pre-scaled by 1/(1-p), deterministic from `seed` ----
    if training and drop_p > 0.0:
        keep = jax.random.bernoulli(jax.random.PRNGKey(seed), 1.0 - drop_p,
                                    (batch_p, hid_p))
        mask = keep.astype(jnp.float32) * (1.0 / (1.0 - drop_p))
    else:
        mask = jnp.ones((batch_p, hid_p), jnp.float32)

    grid = (batch_p // tb,)

    out = pl.pallas_call(
        _ffnn_kernel,
        out_shape=jax.ShapeDtypeStruct((batch_p, out_p), jnp.float32),
        grid=grid,
        in_specs=[
            pl.BlockSpec(memory_space=pltpu.MemorySpace.SMEM),       # [min, 1/max]
            pl.BlockSpec((tb, in_p), lambda i: (i, 0)),              # x tile
            pl.BlockSpec((tb, hid_p), lambda i: (i, 0)),             # dropout mask tile
            pl.BlockSpec((in_p, hid_p), lambda i: (0, 0)),           # W1 (resident)
            pl.BlockSpec((1, hid_p), lambda i: (0, 0)),              # b1 (resident)
            pl.BlockSpec((hid_p, out_p), lambda i: (0, 0)),          # W2 (resident)
            pl.BlockSpec((1, out_p), lambda i: (0, 0)),              # b2 (resident)
        ],
        out_specs=pl.BlockSpec((tb, out_p), lambda i: (i, 0)),
        compiler_params=pltpu.CompilerParams(
            dimension_semantics=("parallel",),
        ),
    )(scal, x_p, mask, w1_p, b1_p, w2_p, b2_p)

    # strip batch / lane padding
    return out[:batch, :output_dim]


if __name__ == "__main__":
    batch, input_dim, hidden_dim, output_dim = 8, 16, 32, 8

    key = jax.random.PRNGKey(0)
    kx, k1, k2, k3, k4 = jax.random.split(key, 5)

    x = jax.random.normal(kx, (batch, input_dim), dtype=jnp.float32)

    # torch.nn.Linear default init: U(-1/sqrt(fan_in), 1/sqrt(fan_in)); weights stored
    # transposed vs torch so the kernel computes x @ W + b directly.
    bound1 = 1.0 / (input_dim ** 0.5)
    w1 = jax.random.uniform(k1, (input_dim, hidden_dim), jnp.float32, -bound1, bound1)
    b1 = jax.random.uniform(k2, (hidden_dim,), jnp.float32, -bound1, bound1)
    bound2 = 1.0 / (hidden_dim ** 0.5)
    w2 = jax.random.uniform(k3, (hidden_dim, output_dim), jnp.float32, -bound2, bound2)
    b2 = jax.random.uniform(k4, (output_dim,), jnp.float32, -bound2, bound2)

    out = ffnn_forward(x, w1, b1, w2, b2, seed=99)
    jax.block_until_ready(out)
    assert out.shape == (batch, output_dim)

    # pure-JAX reference with the same (deterministic) dropout mask
    xn = x - jnp.min(x)
    xn = xn / jnp.max(xn)
    h_ref = jnp.maximum(xn @ w1 + b1, 0.0)
    keep_ref = jax.random.bernoulli(jax.random.PRNGKey(99), 1.0 - DROP_P,
                                    (_round_up(batch, 8), _round_up(hidden_dim, LANE)))
    h_ref = h_ref * keep_ref[:batch, :hidden_dim].astype(jnp.float32) / (1.0 - DROP_P)
    ref = h_ref @ w2 + b2
    assert jnp.allclose(out, ref, rtol=1e-2, atol=1e-2)

    print("KERNEL_OK")
</pallas_src>

<mosaic_0001>
module attributes {stable_mosaic.version = 11 : i64} {
  func.func @_ffnn_kernel(%arg0: i32, %arg1: memref<2xf32, #tpu.memory_space<smem>>, %arg2: memref<8x128xf32, #tpu.memory_space<vmem>>, %arg3: memref<8x128xf32, #tpu.memory_space<vmem>>, %arg4: memref<128x128xf32, #tpu.memory_space<vmem>>, %arg5: memref<1x128xf32, #tpu.memory_space<vmem>>, %arg6: memref<128x128xf32, #tpu.memory_space<vmem>>, %arg7: memref<1x128xf32, #tpu.memory_space<vmem>>, %arg8: memref<8x128xf32, #tpu.memory_space<vmem>>) attributes {dimension_semantics = [#tpu.dimension_semantics<parallel>], iteration_bounds = array<i64: 1>, scalar_prefetch = 0 : i64, scratch_operands = 0 : i64, tpu.core_type = #tpu.core_type<tc>, window_params = [{transform_indices = @transform_0, window_bounds = array<i64: 2>}, {transform_indices = @transform_1, window_bounds = array<i64: 8, 128>}, {transform_indices = @transform_2, window_bounds = array<i64: 8, 128>}, {pipeline_mode = #tpu.pipeline_mode<synchronous>, transform_indices = @transform_3, window_bounds = array<i64: 128, 128>}, {pipeline_mode = #tpu.pipeline_mode<synchronous>, transform_indices = @transform_4, window_bounds = array<i64: 1, 128>}, {pipeline_mode = #tpu.pipeline_mode<synchronous>, transform_indices = @transform_5, window_bounds = array<i64: 128, 128>}, {pipeline_mode = #tpu.pipeline_mode<synchronous>, transform_indices = @transform_6, window_bounds = array<i64: 1, 128>}, {transform_indices = @transform_7, window_bounds = array<i64: 8, 128>}]} {
    %c0 = arith.constant 0 : index
    %0 = memref.load %arg1[%c0] : memref<2xf32, #tpu.memory_space<smem>>
    %c1 = arith.constant 1 : index
    %1 = memref.load %arg1[%c1] : memref<2xf32, #tpu.memory_space<smem>>
    %c0_0 = arith.constant 0 : index
    %c0_1 = arith.constant 0 : index
    %2 = vector.load %arg2[%c0_0, %c0_1] : memref<8x128xf32, #tpu.memory_space<vmem>>, vector<8x128xf32>
    %3 = vector.broadcast %0 : f32 to vector<8x128xf32>
    %4 = arith.subf %2, %3 : vector<8x128xf32>
    %5 = vector.broadcast %1 : f32 to vector<8x128xf32>
    %6 = arith.mulf %4, %5 : vector<8x128xf32>
    %c0_2 = arith.constant 0 : index
    %c0_3 = arith.constant 0 : index
    %7 = vector.load %arg4[%c0_2, %c0_3] : memref<128x128xf32, #tpu.memory_space<vmem>>, vector<128x128xf32>
    %cst = arith.constant dense<0.000000e+00> : vector<8x128xf32>
    %8 = tpu.matmul %6, %7, %cst {dimension_numbers = #tpu.dot_dimension_numbers<[1], [0], [0], [1], [0, 0, 1, 1], [], []>} : vector<8x128xf32>, vector<128x128xf32>, vector<8x128xf32> -> vector<8x128xf32>
    %c0_4 = arith.constant 0 : index
    %c0_5 = arith.constant 0 : index
    %9 = vector.load %arg5[%c0_4, %c0_5] : memref<1x128xf32, #tpu.memory_space<vmem>>, vector<1x128xf32>
    %10 = vector.broadcast %9 : vector<1x128xf32> to vector<8x128xf32>
    %11 = arith.addf %8, %10 : vector<8x128xf32>
    %cst_6 = arith.constant 0.000000e+00 : f32
    %12 = vector.broadcast %cst_6 : f32 to vector<8x128xf32>
    %13 = arith.maximumf %11, %12 : vector<8x128xf32>
    %c0_7 = arith.constant 0 : index
    %c0_8 = arith.constant 0 : index
    %14 = vector.load %arg3[%c0_7, %c0_8] : memref<8x128xf32, #tpu.memory_space<vmem>>, vector<8x128xf32>
    %15 = arith.mulf %13, %14 : vector<8x128xf32>
    %c0_9 = arith.constant 0 : index
    %c0_10 = arith.constant 0 : index
    %16 = vector.load %arg6[%c0_9, %c0_10] : memref<128x128xf32, #tpu.memory_space<vmem>>, vector<128x128xf32>
    %cst_11 = arith.constant dense<0.000000e+00> : vector<8x128xf32>
    %17 = tpu.matmul %15, %16, %cst_11 {dimension_numbers = #tpu.dot_dimension_numbers<[1], [0], [0], [1], [0, 0, 1, 1], [], []>} : vector<8x128xf32>, vector<128x128xf32>, vector<8x128xf32> -> vector<8x128xf32>
    %c0_12 = arith.constant 0 : index
    %c0_13 = arith.constant 0 : index
    %18 = vector.load %arg7[%c0_12, %c0_13] : memref<1x128xf32, #tpu.memory_space<vmem>>, vector<1x128xf32>
    %19 = vector.broadcast %18 : vector<1x128xf32> to vector<8x128xf32>
    %20 = arith.addf %17, %19 : vector<8x128xf32>
    %c0_14 = arith.constant 0 : index
    %c0_15 = arith.constant 0 : index
    %21 = vector.load %arg8[%c0_14, %c0_15] : memref<8x128xf32, #tpu.memory_space<vmem>>, vector<8x128xf32>
    tpu.vector_store %arg8[%c0_14, %c0_15], %20 {strides = array<i32>} : memref<8x128xf32, #tpu.memory_space<vmem>>, vector<8x128xf32>,
    return
  }
  func.func @transform_0(%arg0: i32) -> i32 {
    %c0_i32 = arith.constant 0 : i32
    %c0_i32_0 = arith.constant 0 : i32
    return %c0_i32 : i32
  }
  func.func @transform_1(%arg0: i32) -> (i32, i32) {
    %c0_i32 = arith.constant 0 : i32
    %c0_i32_0 = arith.constant 0 : i32
    return %arg0, %c0_i32 : i32, i32
  }
  func.func @transform_2(%arg0: i32) -> (i32, i32) {
    %c0_i32 = arith.constant 0 : i32
    %c0_i32_0 = arith.constant 0 : i32
    return %arg0, %c0_i32 : i32, i32
  }
  func.func @transform_3(%arg0: i32) -> (i32, i32) {
    %c0_i32 = arith.constant 0 : i32
    %c0_i32_0 = arith.constant 0 : i32
    %c0_i32_1 = arith.constant 0 : i32
    return %c0_i32, %c0_i32_0 : i32, i32
  }
  func.func @transform_4(%arg0: i32) -> (i32, i32) {
    %c0_i32 = arith.constant 0 : i32
    %c0_i32_0 = arith.constant 0 : i32
    %c0_i32_1 = arith.constant 0 : i32
    return %c0_i32, %c0_i32_0 : i32, i32
  }
  func.func @transform_5(%arg0: i32) -> (i32, i32) {
    %c0_i32 = arith.constant 0 : i32
    %c0_i32_0 = arith.constant 0 : i32
    %c0_i32_1 = arith.constant 0 : i32
    return %c0_i32, %c0_i32_0 : i32, i32
  }
  func.func @transform_6(%arg0: i32) -> (i32, i32) {
    %c0_i32 = arith.constant 0 : i32
    %c0_i32_0 = arith.constant 0 : i32
    %c0_i32_1 = arith.constant 0 : i32
    return %c0_i32, %c0_i32_0 : i32, i32
  }
  func.func @transform_7(%arg0: i32) -> (i32, i32) {
    %c0_i32 = arith.constant 0 : i32
    %c0_i32_0 = arith.constant 0 : i32
    return %arg0, %c0_i32 : i32, i32
  }
}

</mosaic_0001>

<bundles_post_ra>
// kernel: tpu_custom_call.1
= control target key start
LH: loop header
LB: loop body
LE: loop exit
PB: predicated region body
PF: predicated region fallthrough
CT: control target
= control target key end

     0   :  { %12 = vsyncpa [#allocation5], 0  ;;  %s745_s0 = inlined_call_operand.hbm [shape: f32[2], index: 0, kind: input, shape index: {}]   ;;  %s746_s1 = inlined_call_operand.hbm [shape: f32[8,128], index: 1, kind: input, shape index: {}]   ;;  %s747_s2 = inlined_call_operand.hbm [shape: f32[8,128], index: 2, kind: input, shape index: {}]   ;;  %s748_s3 = inlined_call_operand.hbm [shape: f32[128,128], index: 3, kind: input, shape index: {}]   ;;  %s749_s4 = inlined_call_operand.vmem [shape: f32[1,128], index: 4, kind: input, shape index: {}]   ;;  %s750_s5 = inlined_call_operand.hbm [shape: f32[128,128], index: 5, kind: input, shape index: {}]   ;;  %s751_s6 = inlined_call_operand.vmem [shape: f32[1,128], index: 6, kind: input, shape index: {}]   ;;  %s752_s7 = inlined_call_operand.hbm [shape: f32[8,128], index: 7, kind: output, shape index: {}]  }
   0x1   :  { %13 = vsyncpa [#allocation3], 0 }
   0x2   :  { %14 = vsyncpa [#allocation8], 0 }
   0x3   :  { %15 = vsyncpa [#allocation11], 0 }
   0x4   :  { %16 = vsyncpa [#allocation4], 0  ;;  %s600_s24 = smov [#allocation7]   ;;  %s601_s26 = smov [#allocation6]  }
   0x5   :  { %s41_s25 = sshll.u32 %s600_s24, 4  ;;  %s31_s27 = sshll.u32 %s601_s26, 4  ;;  %s42_s25 = int_to_ptr.vmem [resolvable:$true] %s41_s25  ;;  %s32_s27 = int_to_ptr.vmem [resolvable:$true] %s31_s27 }
   0x6   :  { %s470_s30 = scalar_lea.hbm %s747_s2, 128 }
   0x7   :  { %p471_p0 = scmp.ne.s32.totalorder %s747_s2, %s470_s30  ;;  %p474_p1 = scmp.lt.u32.totalorder %s470_s30, %s747_s2 }
   0x9   :  { %p476_p2 = pnand %p474_p1, %p471_p0 }
   0xb   :  { %479 = shalt.err (!%p476_p2)
}
   0xc   :  { %s480_s12 = scalar_lea.vmem %s42_s25, 128  ;;  %p485_p4 = scmp.lt.s32.totalorder %s42_s25, %s42_s25 }
   0xd   :  { %p481_p3 = scmp.ne.s32.totalorder %s42_s25, %s480_s12  ;;  %p486_p5 = scmp.lt.s32.totalorder %s480_s12, %s480_s12 }
   0xf   :  { %p487_p6 = por %p486_p5, %p485_p4 }
  0x11   :  { %p488_p7 = pnand %p487_p6, %p481_p3 }
  0x13   :  { %491 = shalt.err (!%p488_p7)
}
  0x14   :  { %44 = dma.hbm_to_vmem [thread:$0]  %s747_s2, 128, %s42_s25, [#allocation8]  }
  0x15   :  { %s492_s17 = scalar_lea.hbm %s745_s0, 16 }
  0x16   :  { %p493_p8 = scmp.ne.s32.totalorder %s745_s0, %s492_s17  ;;  %p496_p9 = scmp.lt.u32.totalorder %s492_s17, %s745_s0 }
  0x18   :  { %p498_p10 = pnand %p496_p9, %p493_p8 }
  0x1a   :  { %501 = shalt.err (!%p498_p10)
}
  0x1b   :  { %s602_s22 = smov [#allocation2]   ;;  %s502_s26 = scalar_lea.hbm %s746_s1, 128 }
  0x1c   :  { %24 = dma.hbm_to_smem %s745_s0, 16, %s602_s22, [#allocation5]  }
  0x1d   :  { %p503_p11 = scmp.ne.s32.totalorder %s746_s1, %s502_s26  ;;  %p506_p12 = scmp.lt.u32.totalorder %s502_s26, %s746_s1 }
  0x1f   :  { %p508_p13 = pnand %p506_p12, %p503_p11 }
  0x21   :  { %511 = shalt.err (!%p508_p13)
}
  0x22   :  { %s512_s9 = scalar_lea.vmem %s32_s27, 128  ;;  %p517_p1 = scmp.lt.s32.totalorder %s32_s27, %s32_s27 }
  0x23   :  { %p513_p0 = scmp.ne.s32.totalorder %s32_s27, %s512_s9  ;;  %p518_p2 = scmp.lt.s32.totalorder %s512_s9, %s512_s9 }
  0x25   :  { %p519_p3 = por %p518_p2, %p517_p1 }
  0x27   :  { %p520_p4 = pnand %p519_p3, %p513_p0 }
  0x29   :  { %523 = shalt.err (!%p520_p4)
}
  0x2a   :  { %34 = dma.hbm_to_vmem [thread:$0]  %s746_s1, 128, %s32_s27, [#allocation3]  }
  0x2b   :  { %s603_s11 = smov [#allocation9]   ;;  %s524_s15 = scalar_lea.hbm %s748_s3, 2048 }
  0x2c   :  { %s50_s12 = sshll.u32 %s603_s11, 4  ;;  %p525_p5 = scmp.ne.s32.totalorder %s748_s3, %s524_s15  ;;  %s51_s12 = int_to_ptr.vmem [resolvable:$true] %s50_s12 }
  0x2d   :  { %p528_p6 = scmp.lt.u32.totalorder %s524_s15, %s748_s3 }
  0x2f   :  { %p530_p7 = pnand %p528_p6, %p525_p5 }
  0x31   :  { %533 = shalt.err (!%p530_p7)
}
  0x32   :  { %s534_s20 = scalar_lea.vmem %s51_s12, 2048  ;;  %p539_p9 = scmp.lt.s32.totalorder %s51_s12, %s51_s12 }
  0x33   :  { %p535_p8 = scmp.ne.s32.totalorder %s51_s12, %s534_s20  ;;  %p540_p10 = scmp.lt.s32.totalorder %s534_s20, %s534_s20 }
  0x35   :  { %p541_p11 = por %p540_p10, %p539_p9 }
  0x37   :  { %p542_p12 = pnand %p541_p11, %p535_p8 }
  0x39   :  { %545 = shalt.err (!%p542_p12)
}
  0x3a   :  { %s604_s1 = smov 128   ;;  %s605_s27 = smov 8  }
  0x3b   :  { %56 = dma.hbm_to_vmem [thread:$0]  %s748_s3, 2048, %s51_s12, [#allocation8], %s604_s1, %s604_s1, %s605_s27  }
  0x3c   :  { %s606_s23 = smov [#allocation10]   ;;  %s546_s26 = scalar_lea.hbm %s750_s5, 2048 }
  0x3d   :  { %s64_s24 = sshll.u32 %s606_s23, 4  ;;  %p547_p13 = scmp.ne.s32.totalorder %s750_s5, %s546_s26  ;;  %s65_s24 = int_to_ptr.vmem [resolvable:$true] %s64_s24 }
  0x3e   :  { %p550_p0 = scmp.lt.u32.totalorder %s546_s26, %s750_s5 }
  0x40   :  { %p552_p1 = pnand %p550_p0, %p547_p13 }
  0x42   :  { %555 = shalt.err (!%p552_p1)
}
  0x43   :  { %s556_s9 = scalar_lea.vmem %s65_s24, 2048  ;;  %p561_p3 = scmp.lt.s32.totalorder %s65_s24, %s65_s24 }
  0x44   :  { %p557_p2 = scmp.ne.s32.totalorder %s65_s24, %s556_s9  ;;  %p562_p4 = scmp.lt.s32.totalorder %s556_s9, %s556_s9 }
  0x46   :  { %p563_p5 = por %p562_p4, %p561_p3 }
  0x48   :  { %p564_p6 = pnand %p563_p5, %p557_p2 }
  0x4a   :  { %567 = shalt.err (!%p564_p6)
}
  0x4b   :  { %70 = dma.hbm_to_vmem [thread:$0]  %s750_s5, 2048, %s65_s24, [#allocation11], %s604_s1, %s604_s1, %s605_s27  }
  0x4c   :  { %590 = dma.done.wait [#allocation5], 16  }
  0x4d   :  { %591 = vsyncadd [#allocation5], 4294967280 }
  0x4e   :  { %592 = dma.done.wait [#allocation3], 128  }
  0x4f   :  { %593 = vsyncadd [#allocation3], 4294967168 }
  0x50   :  { %594 = dma.done.wait [#allocation8], 2176  }
  0x51   :  { %595 = vsyncadd [#allocation8], 4294965120 }
  0x52   :  { %596 = dma.done.wait [#allocation11], 2048  }
  0x53   :  { %597 = vsyncadd [#allocation11], 4294965248 }
  0x54   :  { %88 = sfence }
  0x55   :  { %v96_v0 = vld [vmem:[#allocation9] sm:$0xff]  ;;  %v97_v1 = vld [vmem:[#allocation9 + $0x8] sm:$0xff]  ;;  %v98_v2 = vld [vmem:[#allocation9 + $0x10] sm:$0xff]  ;;  %v607_v3 = vmov 0.0|0.0   ;;  %vm608_vm0 = vmmov 0   ;;  %v609_v6 = vmov 0.0  }
  0x56   :  { %411 = vmatprep.subr.bf16.mxu0 %v607_v3  ;;  %v412_v4 = vpack.c.bf16 %v97_v1, %v96_v0  ;;  %v99_v5 = vld [vmem:[#allocation9 + $0x18] sm:$0xff]  ;;  %373 = vmatprep.mubr.msk.f32.mxu0 %vm608_vm0, %v609_v6  ;;  %v100_v8 = vld [vmem:[#allocation9 + $0x20] sm:$0xff]  ;;  %v101_v9 = vld [vmem:[#allocation9 + $0x28] sm:$0xff]  ;;  %s89_s5 = sld [smem:[#allocation2]]  ;;  %s304_s10 = sld [smem:[#allocation2 + $0x1]] }
  0x57   :  { %435 = vmatprep.subr.bf16.mxu1 %v607_v3  ;;  %408 = vmatprep.mubr.msk.f32.mxu1 %vm608_vm0, %v609_v6  ;;  %v415_v7 = vpack.c.bf16 %v99_v5, %v98_v2  ;;  %v192_v10 = vld [vmem:[#allocation10] sm:$0xff]  ;;  %v193_v11 = vld [vmem:[#allocation10 + $0x8] sm:$0xff]  ;;  %v194_v12 = vld [vmem:[#allocation10 + $0x10] sm:$0xff]  ;;  %v418_v14 = vpack.c.bf16 %v101_v9, %v100_v8  ;;  %s610_s15 = smov [#allocation12]  }
  0x58   :  { %413 = vmatpush3.bf16.msra.mxu0 %v412_v4  ;;  %v195_v13 = vld [vmem:[#allocation10 + $0x18] sm:$0xff]  ;;  %v436_v15 = vpack.c.bf16 %v193_v11, %v192_v10  ;;  %v102_v16 = vld [vmem:[#allocation9 + $0x30] sm:$0xff]  ;;  %v196_v19 = vld [vmem:[#allocation10 + $0x20] sm:$0xff]  ;;  %s292_s16 = sshll.u32 %s610_s15, 4  ;;  %s293_s16 = int_to_ptr.vmem [resolvable:$true] %s292_s16 }
  0x59   :  { %414 = vmatprep.subr.bf16.mxu0 %v607_v3  ;;  %v103_v17 = vld [vmem:[#allocation9 + $0x38] sm:$0xff]  ;;  %v439_v18 = vpack.c.bf16 %v195_v13, %v194_v12  ;;  %v197_v20 = vld [vmem:[#allocation10 + $0x28] sm:$0xff]  ;;  %v104_v22 = vld [vmem:[#allocation9 + $0x40] sm:$0xff]  ;;  %s568_s17 = scalar_lea.vmem %s293_s16, 128  ;;  %p573_p8 = scmp.lt.s32.totalorder %s293_s16, %s293_s16 }
  0x5a   :  { %437 = vmatpush3.bf16.msra.mxu1 %v436_v15  ;;  %v421_v21 = vpack.c.bf16 %v103_v17, %v102_v16  ;;  %v105_v23 = vld [vmem:[#allocation9 + $0x48] sm:$0xff]  ;;  %v442_v24 = vpack.c.bf16 %v197_v20, %v196_v19  ;;  %v198_v25 = vld [vmem:[#allocation10 + $0x30] sm:$0xff]  ;;  %v199_v26 = vld [vmem:[#allocation10 + $0x38] sm:$0xff]  ;;  %p569_p7 = scmp.ne.s32.totalorder %s293_s16, %s568_s17  ;;  %p574_p9 = scmp.lt.s32.totalorder %s568_s17, %s568_s17 }
  0x5b   :  { %438 = vmatprep.subr.bf16.mxu1 %v607_v3  ;;  %v424_v27 = vpack.c.bf16 %v105_v23, %v104_v22  ;;  %v106_v28 = vld [vmem:[#allocation9 + $0x50] sm:$0xff]  ;;  %v107_v29 = vld [vmem:[#allocation9 + $0x58] sm:$0xff]  ;;  %v445_v30 = vpack.c.bf16 %v199_v26, %v198_v25  ;;  %v200_v31 = vld [vmem:[#allocation10 + $0x40] sm:$0xff] }
  0x5c   :  { %416 = vmatpush3.bf16.msra.mxu0 %v415_v7  ;;  %v201_v32 = vld [vmem:[#allocation10 + $0x48] sm:$0xff]  ;;  %v427_v33 = vpack.c.bf16 %v107_v29, %v106_v28  ;;  %v108_v34 = vld [vmem:[#allocation9 + $0x60] sm:$0xff]  ;;  %v202_v37 = vld [vmem:[#allocation10 + $0x50] sm:$0xff]  ;;  %v92_v41 = vstv %s89_s5  ;;  %v94_v47 = vstv %s304_s10  ;;  %p575_p10 = por %p574_p9, %p573_p8 }
  0x5d   :  { %417 = vmatprep.subr.bf16.mxu0 %v607_v3  ;;  %v109_v35 = vld [vmem:[#allocation9 + $0x68] sm:$0xff]  ;;  %v448_v36 = vpack.c.bf16 %v201_v32, %v200_v31  ;;  %v203_v38 = vld [vmem:[#allocation10 + $0x58] sm:$0xff]  ;;  %v91_v40 = vld [vmem:[#allocation6] sm:$0xff] }
  0x5e   :  { %440 = vmatpush3.bf16.msra.mxu1 %v439_v18  ;;  %v430_v39 = vpack.c.bf16 %v109_v35, %v108_v34  ;;  %v110_v42 = vld [vmem:[#allocation9 + $0x70] sm:$0xff]  ;;  %v111_v43 = vld [vmem:[#allocation9 + $0x78] sm:$0xff]  ;;  %v451_v44 = vpack.c.bf16 %v203_v38, %v202_v37  ;;  %v93_v45 = vsub.f32 %v91_v40, %v92_v41  ;;  %v204_v49 = vld [vmem:[#allocation10 + $0x60] sm:$0xff]  ;;  %p576_p11 = pnand %p575_p10, %p569_p7 }
  0x5f   :  { %441 = vmatprep.subr.bf16.mxu1 %v607_v3  ;;  %v433_v46 = vpack.c.bf16 %v111_v43, %v110_v42  ;;  %v205_v50 = vld [vmem:[#allocation10 + $0x68] sm:$0xff]  ;;  %v206_v52 = vld [vmem:[#allocation10 + $0x70] sm:$0xff]  ;;  %v207_v53 = vld [vmem:[#allocation10 + $0x78] sm:$0xff] }
  0x60   :  { %419 = vmatpush3.bf16.msra.mxu0 %v418_v14  ;;  %v95_v48 = vmul.f32 %v94_v47, %v93_v45  ;;  %v454_v51 = vpack.c.bf16 %v205_v50, %v204_v49  ;;  %v457_v54 = vpack.c.bf16 %v207_v53, %v206_v52  ;;  %v305_v55 = vld [vmem:[%s749_s4] ss:$0 sm:$0xff]  ;;  %v190_v59 = vld [vmem:[#allocation7] sm:$0xff] }
  0x61   :  { %420 = vmatprep.subr.bf16.mxu0 %v607_v3  ;;  %v306_v62 = vld [vmem:[%s751_s6] ss:$0 sm:$0xff] }
  0x62   :  { %443 = vmatpush3.bf16.msra.mxu1 %v442_v24 }
  0x63   :  { %444 = vmatprep.subr.bf16.mxu1 %v607_v3 }
  0x64   :  { %422 = vmatpush3.bf16.msra.mxu0 %v421_v21 }
  0x65   :  { %423 = vmatprep.subr.bf16.mxu0 %v607_v3 }
  0x66   :  { %446 = vmatpush3.bf16.msra.mxu1 %v445_v30 }
  0x67   :  { %447 = vmatprep.subr.bf16.mxu1 %v607_v3 }
  0x68   :  { %425 = vmatpush3.bf16.msra.mxu0 %v424_v27 }
  0x69   :  { %426 = vmatprep.subr.bf16.mxu0 %v607_v3 }
  0x6a   :  { %449 = vmatpush3.bf16.msra.mxu1 %v448_v36 }
  0x6b   :  { %450 = vmatprep.subr.bf16.mxu1 %v607_v3 }
  0x6c   :  { %428 = vmatpush3.bf16.msra.mxu0 %v427_v33 }
  0x6d   :  { %429 = vmatprep.subr.bf16.mxu0 %v607_v3 }
  0x6e   :  { %452 = vmatpush3.bf16.msra.mxu1 %v451_v44 }
  0x6f   :  { %453 = vmatprep.subr.bf16.mxu1 %v607_v3 }
  0x70   :  { %431 = vmatpush3.bf16.msra.mxu0 %v430_v39 }
  0x71   :  { %432 = vmatprep.subr.bf16.mxu0 %v607_v3 }
  0x72   :  { %455 = vmatpush3.bf16.msra.mxu1 %v454_v51 }
  0x73   :  { %456 = vmatprep.subr.bf16.mxu1 %v607_v3 }
  0x74   :  { %434 = vmatpush3.bf16.msra.mxu0 %v433_v46 }
  0x76   :  { %458 = vmatpush3.bf16.msra.mxu1 %v457_v54 }
  0x77   :  { %374 = vmatmul.mubr.f32.vlgmr.msra.gmra.mrb[0].mxu0 %v95_v48 }
 0x14a   :  { %v185_v56 = vpop.f32.mrb[0].mxu0 }
 0x14b   :  { %v186_v57 = vadd.f32 %v305_v55, %v185_v56  ;;  %v375_v58 = vpop.f32.mrb[1].mxu0 }
 0x14d   :  { %v189_v60 = vmax.f32 %v186_v57, 0.0 }
 0x14f   :  { %v191_v61 = vmul.f32 %v190_v59, %v189_v60 }
 0x151   :  { %409 = vmatmul.mubr.f32.vlgmr.msra.gmra.mrb[0].mxu1 %v191_v61 }
 0x224   :  { %v281_v63 = vpop.f32.mrb[0].mxu1 }
 0x225   :  { %v282_v0 = vadd.f32 %v306_v62, %v281_v63  ;;  %v410_v1 = vpop.f32.mrb[1].mxu1 }
 0x227   :  { %285 = vst [vmem:[#allocation12] sm:$0xff] %v282_v0 }
 0x228   :  { %579 = shalt.err (!%p576_p11)
}
 0x229   :  { %s580_s19 = scalar_lea.hbm %s752_s7, 128 }
 0x22a   :  { %p581_p12 = scmp.ne.s32.totalorder %s752_s7, %s580_s19  ;;  %p584_p13 = scmp.lt.u32.totalorder %s580_s19, %s752_s7 }
 0x22c   :  { %p586_p0 = pnand %p584_p13, %p581_p12 }
 0x22e   :  { %589 = shalt.err (!%p586_p0)
}
 0x22f   :  { %295 = dma.vmem_to_hbm [thread:$0]  %s293_s16, 128, %s752_s7, [#allocation4]  }
 0x230   :  { %598 = dma.done.wait [#allocation4], 128  }
 0x231   :  { %599 = vsyncadd [#allocation4], 4294967168 }
 0x232   :  { %299 = vsyncpa [#allocation3], 1 }
 0x233   :  { %300 = vsyncpa [#allocation8], 1 }
 0x234   :  { %301 = vsyncpa [#allocation11], 1 }
 0x235   :  { %302 = vsyncpa [#allocation4], 1 }
 0x236   :  { %303 = vsyncpa [#allocation5], 1 }

</bundles_post_ra>
